<compile_context>
chip_gen: v7x
topology: tpu7x:2x2x1
jax: 0.10.0
libtpu: 0.0.40
codegen_flags: <defaults>
</compile_context>

<pallas_src>
import functools

import jax
import jax.numpy as jnp
from jax.experimental import pallas as pl
from jax.experimental.pallas import tpu as pltpu

MARGIN = 0.2
EPS = 1e-6  # torch.nn.PairwiseDistance default eps, added to the difference.


def _round_up(x, m):
    return ((x + m - 1) // m) * m


def _choose_tile(batch, dim, itemsize, vmem_budget_bytes=24 * 1024 * 1024,
                 max_rows_cap=8192):
    """Largest batch tile (multiple of 8) such that the 3 inputs x 2 pipeline
    buffers *plus* the in-kernel f32 temporaries (a/p/n upcasts + two diffs,
    ~5 * 4 bytes/element) fit a conservative VMEM budget that is safe on
    v5e/v6e (128 MiB) and v7x (64 MiB)."""
    bytes_per_row = (3 * 2 * itemsize + 5 * 4) * dim
    max_rows = max(8, vmem_budget_bytes // bytes_per_row)
    tb = min(max_rows_cap, max_rows, _round_up(batch, 8))
    return max(8, (tb // 8) * 8)


def triplet_loss_kernel(a_ref, p_ref, n_ref, out_ref, acc_ref, *,
                        tb, tiles_per_split, batch):
    c = pl.program_id(0)          # core-split index
    j = pl.program_id(1)          # batch-tile index within the split

    @pl.when(j == 0)
    def _init():
        acc_ref[...] = jnp.zeros_like(acc_ref)

    a = a_ref[...].astype(jnp.float32)
    p = p_ref[...].astype(jnp.float32)
    n = n_ref[...].astype(jnp.float32)

    # PyTorch PairwiseDistance(p=2): ||x1 - x2 + eps||_2 over the last dim.
    diff_ap = a - p + EPS
    diff_an = a - n + EPS
    d_ap = jnp.sqrt(jnp.sum(diff_ap * diff_ap, axis=-1, keepdims=True))
    d_an = jnp.sqrt(jnp.sum(diff_an * diff_an, axis=-1, keepdims=True))
    hinge = jnp.maximum(d_ap - d_an + MARGIN, 0.0)            # (tb, 1)

    # Mask rows past the true batch (ragged last tile / clamped duplicate
    # tiles on later splits) so they never contribute to the mean. row0 uses
    # the UNclamped tile index, so duplicated tiles always mask to zero.
    row0 = (c * tiles_per_split + j) * tb
    rows = row0 + jax.lax.broadcasted_iota(jnp.int32, (tb, 1), 0)
    hinge = jnp.where(rows < batch, hinge, 0.0)

    acc_ref[...] += jnp.sum(hinge, axis=0, keepdims=True)     # (1, 1) running sum

    @pl.when(j == tiles_per_split - 1)
    def _flush():
        # Lane-dense unmasked store; the wrapper reads element [8*c, 0].
        out_ref[...] = jnp.broadcast_to(acc_ref[...], out_ref.shape)


def triplet_loss(out_A, out_P, out_N, *, tb=None, num_splits=1,
                 vmem_budget_bytes=24 * 1024 * 1024):
    B, D = out_A.shape
    assert out_P.shape == (B, D) and out_N.shape == (B, D)

    if tb is None:
        tb = _choose_tile(B, D, out_A.dtype.itemsize, vmem_budget_bytes)
    num_tiles = pl.cdiv(B, tb)
    splits = max(1, min(num_splits, num_tiles))
    tiles_per_split = pl.cdiv(num_tiles, splits)

    def in_map(c, j):
        # Clamp so later splits never issue a fully out-of-bounds block read;
        # in-kernel row masking zeroes any duplicated contribution.
        return (jnp.minimum(c * tiles_per_split + j, num_tiles - 1), 0)

    in_spec = pl.BlockSpec((tb, D), in_map)
    out_spec = pl.BlockSpec((8, 128), lambda c, j: (c, 0))

    kernel = functools.partial(
        triplet_loss_kernel, tb=tb, tiles_per_split=tiles_per_split, batch=B)

    partial_sums = pl.pallas_call(
        kernel,
        out_shape=jax.ShapeDtypeStruct((splits * 8, 128), jnp.float32),
        grid_spec=pltpu.PrefetchScalarGridSpec(
            num_scalar_prefetch=0,
            grid=(splits, tiles_per_split),
            in_specs=[in_spec, in_spec, in_spec],
            out_specs=out_spec,
            scratch_shapes=[pltpu.VMEM((1, 1), jnp.float32)],
        ),
        compiler_params=pltpu.CompilerParams(
            dimension_semantics=("parallel", "arbitrary"),
            vmem_limit_bytes=48 * 1024 * 1024,
        ),
    )(out_A, out_P, out_N)

    # One partial hinge-sum per split lives at row 8*c, lane 0.
    return jnp.sum(partial_sums[0::8, 0]) / B


def triplet_loss_ref(out_A, out_P, out_N):
    # Pure-JAX reference matching the PyTorch module semantics (f32 math).
    a = out_A.astype(jnp.float32)
    p = out_P.astype(jnp.float32)
    n = out_N.astype(jnp.float32)
    d_ap = jnp.sqrt(jnp.sum((a - p + EPS) ** 2, axis=-1))
    d_an = jnp.sqrt(jnp.sum((a - n + EPS) ** 2, axis=-1))
    return jnp.mean(jnp.maximum(d_ap - d_an + MARGIN, 0.0))


if __name__ == "__main__":
    key = jax.random.PRNGKey(0)
    kA, kP, kN = jax.random.split(key, 3)
    B, D = 20, 128  # small face-embedding batch; deliberately not a multiple of 8
    out_A = jax.random.normal(kA, (B, D), dtype=jnp.float32)
    out_P = jax.random.normal(kP, (B, D), dtype=jnp.float32)
    out_N = jax.random.normal(kN, (B, D), dtype=jnp.float32)

    ref = triplet_loss_ref(out_A, out_P, out_N)

    # Default tile choice (single masked 24-row block for B=20).
    loss = triplet_loss(out_A, out_P, out_N)
    jax.block_until_ready(loss)
    assert jnp.allclose(loss, ref, atol=1e-5, rtol=1e-5), (loss, ref)

    # Explicit 8-row tile: exercises the multi-tile pipeline, the running
    # accumulator, and ragged-tail row masking.
    loss_tiled = triplet_loss(out_A, out_P, out_N, tb=8)
    jax.block_until_ready(loss_tiled)
    assert jnp.allclose(loss_tiled, ref, atol=1e-5, rtol=1e-5), (loss_tiled, ref)

    # 2-way split with an odd tile count: exercises the clamped duplicate-tile
    # masking path (leading axis stays plain "parallel", safe on every chip).
    loss_split = triplet_loss(out_A, out_P, out_N, tb=8, num_splits=2)
    jax.block_until_ready(loss_split)
    assert jnp.allclose(loss_split, ref, atol=1e-5, rtol=1e-5), (loss_split, ref)

    # bf16 inputs (halves HBM traffic for this memory-bound op); kernel
    # upcasts to f32 internally, reference does the same.
    A16, P16, N16 = (x.astype(jnp.bfloat16) for x in (out_A, out_P, out_N))
    ref16 = triplet_loss_ref(A16, P16, N16)
    loss16 = triplet_loss(A16, P16, N16)
    jax.block_until_ready(loss16)
    assert jnp.allclose(loss16, ref16, atol=1e-4, rtol=1e-4), (loss16, ref16)

    print("KERNEL_OK")
</pallas_src>

<mosaic_0001>
module attributes {stable_mosaic.version = 11 : i64} {
  func.func @triplet_loss_kernel(%arg0: i32, %arg1: i32, %arg2: memref<24x128xf32, #tpu.memory_space<vmem>>, %arg3: memref<24x128xf32, #tpu.memory_space<vmem>>, %arg4: memref<24x128xf32, #tpu.memory_space<vmem>>, %arg5: memref<8x128xf32, #tpu.memory_space<vmem>>, %arg6: memref<1x1xf32, #tpu.memory_space<vmem>>) attributes {dimension_semantics = [#tpu.dimension_semantics<parallel>, #tpu.dimension_semantics<arbitrary>], iteration_bounds = array<i64: 1, 1>, scalar_prefetch = 0 : i64, scratch_operands = 1 : i64, tpu.core_type = #tpu.core_type<tc>, window_params = [{transform_indices = @transform_0, window_bounds = array<i64: 24, 128>}, {transform_indices = @transform_1, window_bounds = array<i64: 24, 128>}, {transform_indices = @transform_2, window_bounds = array<i64: 24, 128>}, {transform_indices = @transform_3, window_bounds = array<i64: 8, 128>}]} {
    %c0_i32 = arith.constant 0 : i32
    %0 = arith.cmpi eq, %arg1, %c0_i32 : i32
    %1 = arith.extui %0 : i1 to i32
    %c0_i32_0 = arith.constant 0 : i32
    %2 = arith.cmpi ne, %1, %c0_i32_0 : i32
    scf.if %2 {
      %cst_19 = arith.constant 0.000000e+00 : f32
      %43 = vector.broadcast %cst_19 : f32 to vector<1x1xf32>
      %c0_20 = arith.constant 0 : index
      %c0_21 = arith.constant 0 : index
      %44 = vector.load %arg6[%c0_20, %c0_21] : memref<1x1xf32, #tpu.memory_space<vmem>>, vector<1x1xf32>
      tpu.vector_store %arg6[%c0_20, %c0_21], %43 {strides = array<i32>} : memref<1x1xf32, #tpu.memory_space<vmem>>, vector<1x1xf32>,
    } else {
    }
    %c0 = arith.constant 0 : index
    %c0_1 = arith.constant 0 : index
    %3 = vector.load %arg2[%c0, %c0_1] : memref<24x128xf32, #tpu.memory_space<vmem>>, vector<24x128xf32>
    %c0_2 = arith.constant 0 : index
    %c0_3 = arith.constant 0 : index
    %4 = vector.load %arg3[%c0_2, %c0_3] : memref<24x128xf32, #tpu.memory_space<vmem>>, vector<24x128xf32>
    %c0_4 = arith.constant 0 : index
    %c0_5 = arith.constant 0 : index
    %5 = vector.load %arg4[%c0_4, %c0_5] : memref<24x128xf32, #tpu.memory_space<vmem>>, vector<24x128xf32>
    %6 = arith.subf %3, %4 : vector<24x128xf32>
    %cst = arith.constant 9.99999997E-7 : f32
    %7 = vector.broadcast %cst : f32 to vector<24x128xf32>
    %8 = arith.addf %6, %7 : vector<24x128xf32>
    %9 = arith.subf %3, %5 : vector<24x128xf32>
    %cst_6 = arith.constant 9.99999997E-7 : f32
    %10 = vector.broadcast %cst_6 : f32 to vector<24x128xf32>
    %11 = arith.addf %9, %10 : vector<24x128xf32>
    %12 = arith.mulf %8, %8 : vector<24x128xf32>
    %cst_7 = arith.constant dense<0.000000e+00> : vector<24xf32>
    %13 = vector.multi_reduction <add>, %12, %cst_7 [1] : vector<24x128xf32> to vector<24xf32>
    %14 = vector.shape_cast %13 : vector<24xf32> to vector<24x1xf32>
    %15 = math.sqrt %14 : vector<24x1xf32>
    %16 = arith.mulf %11, %11 : vector<24x128xf32>
    %cst_8 = arith.constant dense<0.000000e+00> : vector<24xf32>
    %17 = vector.multi_reduction <add>, %16, %cst_8 [1] : vector<24x128xf32> to vector<24xf32>
    %18 = vector.shape_cast %17 : vector<24xf32> to vector<24x1xf32>
    %19 = math.sqrt %18 : vector<24x1xf32>
    %20 = arith.subf %15, %19 : vector<24x1xf32>
    %cst_9 = arith.constant 2.000000e-01 : f32
    %21 = vector.broadcast %cst_9 : f32 to vector<24x1xf32>
    %22 = arith.addf %20, %21 : vector<24x1xf32>
    %cst_10 = arith.constant 0.000000e+00 : f32
    %23 = vector.broadcast %cst_10 : f32 to vector<24x1xf32>
    %24 = arith.maximumf %22, %23 : vector<24x1xf32>
    %c1_i32 = arith.constant 1 : i32
    %25 = arith.muli %arg0, %c1_i32 : i32
    %26 = arith.addi %25, %arg1 : i32
    %c24_i32 = arith.constant 24 : i32
    %27 = arith.muli %26, %c24_i32 : i32
    %28 = tpu.iota {dimensions = array<i32: 0>} : vector<24x1xi32>
    %29 = vector.broadcast %27 : i32 to vector<24x1xi32>
    %30 = arith.addi %29, %28 : vector<24x1xi32>
    %c20_i32 = arith.constant 20 : i32
    %31 = vector.broadcast %c20_i32 : i32 to vector<24x1xi32>
    %32 = arith.cmpi slt, %30, %31 : vector<24x1xi32>
    %cst_11 = arith.constant 0.000000e+00 : f32
    %33 = vector.broadcast %cst_11 : f32 to vector<24x1xf32>
    %34 = arith.select %32, %24, %33 : vector<24x1xi1>, vector<24x1xf32>
    %c0_12 = arith.constant 0 : index
    %c0_13 = arith.constant 0 : index
    %35 = vector.load %arg6[%c0_12, %c0_13] : memref<1x1xf32, #tpu.memory_space<vmem>>, vector<1x1xf32>
    %cst_14 = arith.constant dense<0.000000e+00> : vector<1xf32>
    %36 = vector.multi_reduction <add>, %34, %cst_14 [0] : vector<24x1xf32> to vector<1xf32>
    %37 = vector.shape_cast %36 : vector<1xf32> to vector<1x1xf32>
    %38 = arith.addf %35, %37 : vector<1x1xf32>
    %c0_15 = arith.constant 0 : index
    %c0_16 = arith.constant 0 : index
    %39 = vector.load %arg6[%c0_15, %c0_16] : memref<1x1xf32, #tpu.memory_space<vmem>>, vector<1x1xf32>
    tpu.vector_store %arg6[%c0_15, %c0_16], %38 {strides = array<i32>} : memref<1x1xf32, #tpu.memory_space<vmem>>, vector<1x1xf32>,
    %c0_i32_17 = arith.constant 0 : i32
    %40 = arith.cmpi eq, %arg1, %c0_i32_17 : i32
    %41 = arith.extui %40 : i1 to i32
    %c0_i32_18 = arith.constant 0 : i32
    %42 = arith.cmpi ne, %41, %c0_i32_18 : i32
    scf.if %42 {
      %c0_19 = arith.constant 0 : index
      %c0_20 = arith.constant 0 : index
      %43 = vector.load %arg6[%c0_19, %c0_20] : memref<1x1xf32, #tpu.memory_space<vmem>>, vector<1x1xf32>
      %44 = vector.shape_cast %43 : vector<1x1xf32> to vector<1x1xf32>
      %45 = vector.broadcast %44 : vector<1x1xf32> to vector<8x128xf32>
      %c0_21 = arith.constant 0 : index
      %c0_22 = arith.constant 0 : index
      %46 = vector.load %arg5[%c0_21, %c0_22] : memref<8x128xf32, #tpu.memory_space<vmem>>, vector<8x128xf32>
      tpu.vector_store %arg5[%c0_21, %c0_22], %45 {strides = array<i32>} : memref<8x128xf32, #tpu.memory_space<vmem>>, vector<8x128xf32>,
    } else {
    }
    return
  }
  func.func @transform_0(%arg0: i32, %arg1: i32) -> (i32, i32) {
    %c1_i32 = arith.constant 1 : i32
    %0 = arith.muli %arg0, %c1_i32 : i32
    %1 = arith.addi %0, %arg1 : i32
    %c0_i32 = arith.constant 0 : i32
    %2 = arith.minsi %1, %c0_i32 : i32
    %c0_i32_0 = arith.constant 0 : i32
    %c0_i32_1 = arith.constant 0 : i32
    return %2, %c0_i32_0 : i32, i32
  }
  func.func @transform_1(%arg0: i32, %arg1: i32) -> (i32, i32) {
    %c1_i32 = arith.constant 1 : i32
    %0 = arith.muli %arg0, %c1_i32 : i32
    %1 = arith.addi %0, %arg1 : i32
    %c0_i32 = arith.constant 0 : i32
    %2 = arith.minsi %1, %c0_i32 : i32
    %c0_i32_0 = arith.constant 0 : i32
    %c0_i32_1 = arith.constant 0 : i32
    return %2, %c0_i32_0 : i32, i32
  }
  func.func @transform_2(%arg0: i32, %arg1: i32) -> (i32, i32) {
    %c1_i32 = arith.constant 1 : i32
    %0 = arith.muli %arg0, %c1_i32 : i32
    %1 = arith.addi %0, %arg1 : i32
    %c0_i32 = arith.constant 0 : i32
    %2 = arith.minsi %1, %c0_i32 : i32
    %c0_i32_0 = arith.constant 0 : i32
    %c0_i32_1 = arith.constant 0 : i32
    return %2, %c0_i32_0 : i32, i32
  }
  func.func @transform_3(%arg0: i32, %arg1: i32) -> (i32, i32) {
    %c0_i32 = arith.constant 0 : i32
    %c0_i32_0 = arith.constant 0 : i32
    return %arg0, %c0_i32 : i32, i32
  }
}

</mosaic_0001>

<bundles_post_ra>
// kernel: tpu_custom_call.1
= control target key start
LH: loop header
LB: loop body
LE: loop exit
PB: predicated region body
PF: predicated region fallthrough
CT: control target
= control target key end

     0   :  { %8 = vsyncpa [#allocation4], 0  ;;  %s456_s0 = inlined_call_operand.hbm [shape: f32[20,128], index: 0, kind: input, shape index: {}]   ;;  %s457_s1 = inlined_call_operand.hbm [shape: f32[20,128], index: 1, kind: input, shape index: {}]   ;;  %s458_s2 = inlined_call_operand.hbm [shape: f32[20,128], index: 2, kind: input, shape index: {}]   ;;  %s459_s3 = inlined_call_operand.hbm [shape: f32[8,128], index: 3, kind: output, shape index: {}]  }
   0x1   :  { %9 = vsyncpa [#allocation7], 0 }
   0x2   :  { %10 = vsyncpa [#allocation5], 0  ;;  %s362_s12 = smov [#allocation6]   ;;  %s363_s14 = smov [#allocation3]  }
   0x3   :  { %s40_s13 = sshll.u32 %s362_s12, 4  ;;  %s22_s15 = sshll.u32 %s363_s14, 4  ;;  %s41_s13 = int_to_ptr.vmem [resolvable:$true] %s40_s13  ;;  %s390_s15 = int_to_ptr.vmem [resolvable:$true] %s22_s15 }
   0x4   :  { %s268_s18 = scalar_lea.hbm %s457_s1, 384 }
   0x5   :  { %p269_p0 = scmp.ne.s32.totalorder %s457_s1, %s268_s18  ;;  %p272_p1 = scmp.lt.u32.totalorder %s268_s18, %s457_s1 }
   0x7   :  { %p274_p2 = pnand %p272_p1, %p269_p0 }
   0x9   :  { %277 = shalt.err (!%p274_p2)
}
   0xa   :  { %s278_s23 = scalar_lea.vmem %s41_s13, 384  ;;  %p283_p4 = scmp.lt.s32.totalorder %s41_s13, %s41_s13 }
   0xb   :  { %p279_p3 = scmp.ne.s32.totalorder %s41_s13, %s278_s23  ;;  %p284_p5 = scmp.lt.s32.totalorder %s278_s23, %s278_s23 }
   0xd   :  { %p285_p6 = por %p284_p5, %p283_p4 }
   0xf   :  { %p286_p7 = pnand %p285_p6, %p279_p3 }
  0x11   :  { %289 = shalt.err (!%p286_p7)
}
  0x12   :  { %s364_s24 = smov 128   ;;  %s365_s25 = smov 8  }
  0x13   :  { %46 = dma.hbm_to_vmem [thread:$0]  %s457_s1, 384, %s41_s13, [#allocation7], %s364_s24, %s364_s24, %s365_s25  }
  0x14   :  { %s290_s30 = scalar_lea.hbm %s456_s0, 384 }
  0x15   :  { %p291_p8 = scmp.ne.s32.totalorder %s456_s0, %s290_s30  ;;  %p294_p9 = scmp.lt.u32.totalorder %s290_s30, %s456_s0 }
  0x17   :  { %p296_p10 = pnand %p294_p9, %p291_p8 }
  0x19   :  { %299 = shalt.err (!%p296_p10)
}
  0x1a   :  { %s300_s8 = scalar_lea.vmem %s390_s15, 384  ;;  %p305_p12 = scmp.lt.s32.totalorder %s390_s15, %s390_s15 }
  0x1b   :  { %p301_p11 = scmp.ne.s32.totalorder %s390_s15, %s300_s8  ;;  %p306_p13 = scmp.lt.s32.totalorder %s300_s8, %s300_s8 }
  0x1d   :  { %p307_p0 = por %p306_p13, %p305_p12 }
  0x1f   :  { %p308_p1 = pnand %p307_p0, %p301_p11 }
  0x21   :  { %311 = shalt.err (!%p308_p1)
}
  0x22   :  { %28 = dma.hbm_to_vmem [thread:$0]  %s456_s0, 384, %s390_s15, [#allocation4], %s364_s24, %s364_s24, %s365_s25  }
  0x23   :  { %s366_s10 = smov [#allocation8]   ;;  %s312_s14 = scalar_lea.hbm %s458_s2, 384 }
  0x24   :  { %s58_s11 = sshll.u32 %s366_s10, 4  ;;  %p313_p2 = scmp.ne.s32.totalorder %s458_s2, %s312_s14  ;;  %s59_s11 = int_to_ptr.vmem [resolvable:$true] %s58_s11 }
  0x25   :  { %p316_p3 = scmp.lt.u32.totalorder %s312_s14, %s458_s2 }
  0x27   :  { %p318_p4 = pnand %p316_p3, %p313_p2 }
  0x29   :  { %321 = shalt.err (!%p318_p4)
}
  0x2a   :  { %s322_s20 = scalar_lea.vmem %s59_s11, 384  ;;  %p327_p6 = scmp.lt.s32.totalorder %s59_s11, %s59_s11 }
  0x2b   :  { %p323_p5 = scmp.ne.s32.totalorder %s59_s11, %s322_s20  ;;  %p328_p7 = scmp.lt.s32.totalorder %s322_s20, %s322_s20 }
  0x2d   :  { %p329_p8 = por %p328_p7, %p327_p6 }
  0x2f   :  { %p330_p9 = pnand %p329_p8, %p323_p5 }
  0x31   :  { %333 = shalt.err (!%p330_p9)
}
  0x32   :  { %64 = dma.hbm_to_vmem [thread:$0]  %s458_s2, 384, %s59_s11, [#allocation7], %s364_s24, %s364_s24, %s365_s25  }
  0x33   :  { %356 = dma.done.wait [#allocation4], 384  }
  0x34   :  { %357 = vsyncadd [#allocation4], 4294966912 }
  0x35   :  { %358 = dma.done.wait [#allocation7], 768  }
  0x36   :  { %359 = vsyncadd [#allocation7], 4294966528  ;;  %vm90_vm0 = vcmask 0   ;;  %v367_v0 = vmov 0.0   ;;  %v92_v1 = vld [vmem:[#allocation3] sm:$0xff]  ;;  %v98_v2 = vld [vmem:[#allocation8] sm:$0xff]  ;;  %v184_v44 = vlaneseq }
  0x37   :  { %91 = vst.msk [vmem:[#allocation2] sm:$0x1] %vm90_vm0, %v367_v0  ;;  %v95_v3 = vld [vmem:[#allocation6] sm:$0xff]  ;;  %v107_v4 = vsub.f32 %v92_v1, %v98_v2  ;;  %v93_v6 = vld [vmem:[#allocation3 + $0x8] sm:$0xff]  ;;  %v96_v8 = vld [vmem:[#allocation6 + $0x8] sm:$0xff]  ;;  %v368_v28 = vmov 0  }
  0x38   :  { %v101_v5 = vsub.f32 %v92_v1, %v95_v3  ;;  %v99_v7 = vld [vmem:[#allocation8 + $0x8] sm:$0xff]  ;;  %v102_v10 = vsub.f32 %v93_v6, %v96_v8  ;;  %v94_v11 = vld [vmem:[#allocation3 + $0x10] sm:$0xff]  ;;  %v100_v12 = vld [vmem:[#allocation8 + $0x10] sm:$0xff]  ;;  %255 = vset.pattern.permute.xlu0 %v368_v28  ;;  %v185_v60 = vshrl.u32 %v184_v44, 7  ;;  %s369_s2 = smov [#allocation9]  }
  0x39   :  { %v108_v9 = vsub.f32 %v93_v6, %v99_v7  ;;  %v97_v13 = vld [vmem:[#allocation6 + $0x10] sm:$0xff]  ;;  %v110_v14 = vadd.f32 1e-06, %v107_v4  ;;  %v109_v16 = vsub.f32 %v94_v11, %v100_v12  ;;  %s230_s21 = sshll.u32 %s369_s2, 4  ;;  %s231_s21 = int_to_ptr.vmem [resolvable:$true] %s230_s21 }
  0x3a   :  { %v104_v15 = vadd.f32 1e-06, %v101_v5  ;;  %v103_v17 = vsub.f32 %v94_v11, %v97_v13  ;;  %v105_v19 = vadd.f32 1e-06, %v102_v10  ;;  %v187_v6 = vadd.s32 16, %v185_v60  ;;  %s334_s22 = scalar_lea.vmem %s231_s21, 128  ;;  %p339_p11 = scmp.lt.s32.totalorder %s231_s21, %s231_s21 }
  0x3b   :  { %v111_v18 = vadd.f32 1e-06, %v108_v9  ;;  %v143_v20 = vmul.f32 %v110_v14, %v110_v14  ;;  %v112_v24 = vadd.f32 1e-06, %v109_v16  ;;  %p335_p10 = scmp.ne.s32.totalorder %s231_s21, %s334_s22  ;;  %p340_p12 = scmp.lt.s32.totalorder %s334_s22, %s334_s22 }
  0x3c   :  { %v113_v21 = vmul.f32 %v104_v15, %v104_v15  ;;  %v114_v23 = vmul.f32 %v105_v19, %v105_v19  ;;  %v106_v25 = vadd.f32 1e-06, %v103_v17  ;;  %vm194_vm13 = vcmp.lt.s32.totalorder %v187_v6, 20 }
  0x3d   :  { %146 = vadd.xlane.f32.xlu1 %v143_v20  ;;  %v144_v22 = vmul.f32 %v111_v18, %v111_v18  ;;  %v145_v26 = vmul.f32 %v112_v24, %v112_v24  ;;  %p341_p13 = por %p340_p12, %p339_p11 }
  0x3e   :  { %116 = vadd.xlane.f32.xlu0 %v113_v21  ;;  %v115_v27 = vmul.f32 %v106_v25, %v106_v25  ;;  %v198_v21 = vld [vmem:[#allocation2] sm:$0x1] }
  0x3f   :  { %p342_p0 = pnand %p341_p13, %p335_p10 }
  0x41   :  { %148 = vadd.xlane.f32.xlu1 %v144_v22 }
  0x42   :  { %118 = vadd.xlane.f32.xlu0 %v114_v23 }
  0x45   :  { %150 = vadd.xlane.f32.xlu1 %v145_v26 }
  0x46   :  { %120 = vadd.xlane.f32.xlu0 %v115_v27 }
  0xca   :  { %v147_v29 = vpop.xlane.xlu1 %146 }
  0xcb   :  { %v117_v30 = vpop.xlane.xlu0 %116  ;;  %256 = vrsqrt.f32 %v147_v29  ;;  %vm154_vm1 = vcmp.eq.f32.partialorder %v147_v29, inf  ;;  %v157_v41 = vand.u32 2147483648, %v147_v29  ;;  %vm156_vm3 = vcmp.eq.f32.partialorder %v147_v29, 0.0 }
  0xcc   :  { %258 = vrsqrt.f32 %v117_v30  ;;  %vm124_vm2 = vcmp.eq.f32.partialorder %v117_v30, inf  ;;  %v127_v43 = vand.u32 2147483648, %v117_v30  ;;  %vm126_vm4 = vcmp.eq.f32.partialorder %v117_v30, 0.0 }
  0xce   :  { %v149_v31 = vpop.xlane.xlu1 %148 }
  0xcf   :  { %v119_v32 = vpop.xlane.xlu0 %118  ;;  %260 = vrsqrt.f32 %v149_v31  ;;  %vm161_vm5 = vcmp.eq.f32.partialorder %v149_v31, inf  ;;  %v164_v49 = vand.u32 2147483648, %v149_v31  ;;  %vm163_vm6 = vcmp.eq.f32.partialorder %v149_v31, 0.0 }
  0xd0   :  { %262 = vrsqrt.f32 %v119_v32  ;;  %vm131_vm7 = vcmp.eq.f32.partialorder %v119_v32, inf  ;;  %v134_v52 = vand.u32 2147483648, %v119_v32  ;;  %vm133_vm8 = vcmp.eq.f32.partialorder %v119_v32, 0.0 }
  0xd2   :  { %v151_v33 = vpop.xlane.xlu1 %150 }
  0xd3   :  { %v121_v34 = vpop.xlane.xlu0 %120  ;;  %264 = vrsqrt.f32 %v151_v33  ;;  %vm168_vm9 = vcmp.eq.f32.partialorder %v151_v33, inf  ;;  %v171_v62 = vand.u32 2147483648, %v151_v33  ;;  %vm170_vm10 = vcmp.eq.f32.partialorder %v151_v33, 0.0 }
  0xd4   :  { %266 = vrsqrt.f32 %v121_v34  ;;  %vm138_vm11 = vcmp.eq.f32.partialorder %v121_v34, inf  ;;  %v141_v1 = vand.u32 2147483648, %v121_v34  ;;  %vm140_vm12 = vcmp.eq.f32.partialorder %v121_v34, 0.0 }
  0xd5   :  { %v257_v35 = vpop.eup %256 }
  0xd6   :  { %v259_v36 = vpop.eup %258  ;;  %v153_v37 = vmul.f32 %v257_v35, %v147_v29 }
  0xd7   :  { %v123_v38 = vmul.f32 %v259_v36, %v117_v30 }
  0xd8   :  { %v155_v39 = vsel %vm154_vm1, %v147_v29, %v153_v37 }
  0xd9   :  { %v261_v40 = vpop.eup %260  ;;  %v125_v42 = vsel %vm124_vm2, %v117_v30, %v123_v38  ;;  %v158_v47 = vsel %vm156_vm3, %v157_v41, %v155_v39 }
  0xda   :  { %v263_v45 = vpop.eup %262  ;;  %v160_v46 = vmul.f32 %v261_v40, %v149_v31  ;;  %v128_v48 = vsel %vm126_vm4, %v127_v43, %v125_v42 }
  0xdb   :  { %v130_v50 = vmul.f32 %v263_v45, %v119_v32  ;;  %v173_v57 = vsub.f32 %v128_v48, %v158_v47 }
  0xdc   :  { %v162_v51 = vsel %vm161_vm5, %v149_v31, %v160_v46 }
  0xdd   :  { %v265_v53 = vpop.eup %264  ;;  %v165_v54 = vsel %vm163_vm6, %v164_v49, %v162_v51  ;;  %v132_v55 = vsel %vm131_vm7, %v119_v32, %v130_v50  ;;  %v176_v5 = vadd.f32 0.2, %v173_v57 }
  0xde   :  { %v267_v56 = vpop.eup %266  ;;  %v135_v58 = vsel %vm133_vm8, %v134_v52, %v132_v55  ;;  %v167_v59 = vmul.f32 %v265_v53, %v151_v33 }
  0xdf   :  { %v174_v61 = vsub.f32 %v135_v58, %v165_v54  ;;  %v137_v63 = vmul.f32 %v267_v56, %v121_v34  ;;  %v179_v11 = vmax.f32 %v176_v5, 0.0 }
  0xe0   :  { %v169_v0 = vsel %vm168_vm9, %v151_v33, %v167_v59 }
  0xe1   :  { %v177_v2 = vadd.f32 0.2, %v174_v61  ;;  %v172_v3 = vsel %vm170_vm10, %v171_v62, %v169_v0  ;;  %v139_v4 = vsel %vm138_vm11, %v121_v34, %v137_v63 }
  0xe2   :  { %v142_v7 = vsel %vm140_vm12, %v141_v1, %v139_v4 }
  0xe3   :  { %v175_v8 = vsub.f32 %v142_v7, %v172_v3  ;;  %v180_v9 = vmax.f32 %v177_v2, 0.0 }
  0xe5   :  { %v178_v10 = vadd.f32 0.2, %v175_v8  ;;  %v199_v13 = vadd.f32 %v180_v9, %v179_v11 }
  0xe7   :  { %v181_v12 = vmax.f32 %v178_v10, 0.0 }
  0xe9   :  { %v197_v14 = vsel %vm194_vm13, %v181_v12, 0.0 }
  0xea   :  { %v200_v15 = vadd.f32 %v199_v13, %v197_v14 }
  0xec   :  { %v201_v16 = vrot.slane %v200_v15, 4 }
  0xee   :  { %v202_v17 = vadd.f32 %v201_v16, %v200_v15 }
  0xf0   :  { %v203_v18 = vrot.slane %v202_v17, 2 }
  0xf2   :  { %v204_v19 = vadd.f32 %v203_v18, %v202_v17 }
  0xf4   :  { %v205_v20 = vrot.slane %v204_v19, 1 }
  0xf6   :  { %v206_v22 = vadd.f32 %v205_v20, %v204_v19 }
  0xf8   :  { %v207_v23 = vadd.f32 %v206_v22, %v198_v21 }
  0xfa   :  { %209 = vst.msk [vmem:[#allocation2] sm:$0x1] %vm90_vm0, %v207_v23 }
 0x101   :  { %v246_v24 = vld [vmem:[#allocation2] ss:$0 sm:$0xff] }
 0x102   :  { %220 = vperm.xlu0 %255, %v246_v24  }
 0x181   :  { %v221_v25 = vpop.permute.xlu0 %220 }
 0x182   :  { %223 = vst [vmem:[#allocation9] sm:$0xff] %v221_v25 }
 0x183   :  { %345 = shalt.err (!%p342_p0)
}
 0x184   :  { %s346_s25 = scalar_lea.hbm %s459_s3, 128 }
 0x185   :  { %p347_p1 = scmp.ne.s32.totalorder %s459_s3, %s346_s25  ;;  %p350_p2 = scmp.lt.u32.totalorder %s346_s25, %s459_s3 }
 0x187   :  { %p352_p3 = pnand %p350_p2, %p347_p1 }
 0x189   :  { %355 = shalt.err (!%p352_p3)
}
 0x18a   :  { %233 = dma.vmem_to_hbm [thread:$0]  %s231_s21, 128, %s459_s3, [#allocation5]  }
 0x18b   :  { %360 = dma.done.wait [#allocation5], 128  }
 0x18c   :  { %361 = vsyncadd [#allocation5], 4294967168 }
 0x18d   :  { %237 = vsyncpa [#allocation4], 1 }
 0x18e   :  { %238 = vsyncpa [#allocation7], 1 }
 0x18f   :  { %239 = vsyncpa [#allocation5], 1 }

</bundles_post_ra>
